<compile_context>
chip_gen: v7x
topology: tpu7x:2x2x1
jax: 0.10.0
libtpu: 0.0.40
codegen_flags: <defaults>
</compile_context>

<pallas_src>
import math

import jax
import jax.numpy as jnp
from jax.experimental import pallas as pl
from jax.experimental.pallas import tpu as pltpu


_VMEM_LIMIT_BYTES = 32 * 1024 * 1024  # safe on v5e/v6e/v7x; blocks below stay <~16-17 MiB


def _round_up(v, m):
    return -(-v // m) * m


def _pick_tile(total, target, multiple):
    """Big tile (amortize ~0.35us/step) but capped at ceil(total/2) rounded to
    `multiple`, so the 'parallel' grid axis has >= 2 steps whenever the problem is
    large enough to feed both v7x TensorCores."""
    if total <= multiple:
        return total
    half = _round_up(-(-total // 2), multiple)
    return max(multiple, min(target, half))


def _bcast_kernel(x_ref, sr_ref, b_ref, o_ref):
    # x_ref: (TM, 1), sr_ref/b_ref: (1, TN), o_ref: (TM, TN). Pure VPU mul-add.
    o_ref[...] = (x_ref[...] * sr_ref[...] + b_ref[...]).astype(o_ref.dtype)


def _packed_kernel(x_ref, srm_ref, bt_ref, o_ref):
    # Lane-dense packed layout (G = 128 // n logical rows per 128-lane output row):
    #   x_ref:   (TR, G)    G consecutive input scalars per packed output row
    #   srm_ref: (G, 128)   srm[k, l] = sr[l % n] if l // n == k else 0
    #   bt_ref:  (1, 128)   (Lambda * radius) tiled G times
    #   o_ref:   (TR, 128)  lane-dense view of G rows of the (M, N) output
    # Single small-K MXU dot replaces the old per-group VPU/XLU unroll; the MXU is
    # otherwise idle and trivially keeps pace with the HBM store roofline.
    acc = jnp.dot(x_ref[...].astype(jnp.float32), srm_ref[...],
                  preferred_element_type=jnp.float32)
    o_ref[...] = (acc + bt_ref[...]).astype(o_ref.dtype)


def geo_linear1d(x, weight, Lambda, radius):
    """x: (..., 1). weight: (1, N). Lambda: (N,) or None. radius: (N,). Returns (..., N)."""
    n = weight.shape[-1]
    lead = x.shape[:-1]
    m = int(math.prod(lead)) if lead else 1
    out_dtype = x.dtype
    itemsize = jnp.dtype(out_dtype).itemsize
    sublane = 8 * max(1, 4 // itemsize)          # (8,128) f32 tile rule; 16 for bf16

    # Fold the tiny N-length parameters once (matches torch: NaN for weight == 0).
    sign_w = (weight / jnp.abs(weight)).reshape(n)
    rad = radius.reshape(n)
    sr = (sign_w * rad).astype(jnp.float32)
    if Lambda is None:
        b = jnp.zeros((n,), jnp.float32)
    else:
        b = (Lambda.reshape(n) * rad).astype(jnp.float32)

    cost = pl.CostEstimate(
        flops=2 * m * n,
        transcendentals=0,
        bytes_accessed=itemsize * (m * n + m) + 8 * n,
    )

    use_packed = (n < 128) and (128 % n == 0)

    if use_packed:
        g = 128 // n
        m_pad = _round_up(m, g)                   # pad M so every store is lane-dense
        r = m_pad // g

        # srm[k, l] = sr[l % n] where l // n == k, else 0  ->  (g, 128) MXU operand.
        lane_group = jnp.arange(128, dtype=jnp.int32) // n
        sr_tiled = jnp.tile(sr, g)                                           # (128,)
        srm = jnp.where(lane_group[None, :] == jnp.arange(g, dtype=jnp.int32)[:, None],
                        sr_tiled[None, :], 0.0).astype(jnp.float32)          # (g, 128)
        bt = jnp.tile(b, g).reshape(1, 128)

        xf = x.reshape(m)
        if m_pad != m:
            xf = jnp.pad(xf, (0, m_pad - m))
        xg = xf.reshape(r, g)

        # VMEM budget: the (tr, g) x block lane-pads to (tr, 128) in VMEM, so the x
        # buffer is as large as the (tr, 128) output buffer.  tr = 8192 (f32) ->
        # 2 buffers x 2 arrays x 4 MiB = 16 MiB << 32 MiB scoped limit.
        tr = _pick_tile(r, 8192, sublane)
        out_packed = pl.pallas_call(
            _packed_kernel,
            out_shape=jax.ShapeDtypeStruct((r, 128), out_dtype),
            grid=(pl.cdiv(r, tr),),
            in_specs=[
                pl.BlockSpec((tr, g), lambda i: (i, 0)),
                pl.BlockSpec((g, 128), lambda i: (0, 0)),
                pl.BlockSpec((1, 128), lambda i: (0, 0)),
            ],
            out_specs=pl.BlockSpec((tr, 128), lambda i: (i, 0)),
            compiler_params=pltpu.CompilerParams(
                dimension_semantics=("parallel",),
                vmem_limit_bytes=_VMEM_LIMIT_BYTES,
            ),
            cost_estimate=cost,
        )(xg, srm, bt)
        out2d = out_packed.reshape(m_pad, n)[:m]  # contiguous view + row slice
    else:
        # General tiled broadcast path.  Pad N up to a multiple of 128 when the extra
        # write traffic is small (<= 12.5%) so every store is a full-lane vst.
        n_pad128 = _round_up(n, 128)
        pad_cols = (n % 128 != 0) and ((n_pad128 - n) * 8 <= n)
        n_eff = n_pad128 if pad_cols else n
        sr_e = jnp.pad(sr, (0, n_eff - n)) if n_eff != n else sr
        b_e = jnp.pad(b, (0, n_eff - n)) if n_eff != n else b

        if n_eff % 128 == 0:
            if n_eff <= 2048:
                tn = n_eff                        # one lane-dense j-block, never ragged
            else:
                tn = 128
                for cand in range(2048, 127, -128):
                    if n_eff % cand == 0:         # divides N -> no ragged last j-block
                        tn = cand
                        break
        else:
            tn = n_eff                            # masked fallback (rare, ragged N)
            # TODO(synk): small non-divisor N could be padded to a power of two and
            # routed through the packed path at the cost of extra write traffic.

        # ~4 MiB output block; the (tm, 1) x block lane-pads to (tm, 128) in VMEM.
        rows_target = max(sublane,
                          ((4 << 20) // (max(tn, 128) * itemsize)) // sublane * sublane)
        rows_target = min(rows_target, 8192)
        tm = _pick_tile(m, rows_target, sublane)

        x2 = x.reshape(m, 1)
        out_full = pl.pallas_call(
            _bcast_kernel,
            out_shape=jax.ShapeDtypeStruct((m, n_eff), out_dtype),
            grid=(pl.cdiv(m, tm), pl.cdiv(n_eff, tn)),
            in_specs=[
                pl.BlockSpec((tm, 1), lambda i, j: (i, 0)),
                pl.BlockSpec((1, tn), lambda i, j: (0, j)),
                pl.BlockSpec((1, tn), lambda i, j: (0, j)),
            ],
            out_specs=pl.BlockSpec((tm, tn), lambda i, j: (i, j)),
            compiler_params=pltpu.CompilerParams(
                dimension_semantics=("parallel", "parallel"),
                vmem_limit_bytes=_VMEM_LIMIT_BYTES,
            ),
            cost_estimate=cost,
        )(x2, sr_e.reshape(1, n_eff), b_e.reshape(1, n_eff))
        out2d = out_full[:, :n] if n_eff != n else out_full

    return out2d.reshape(*lead, n)


def init_geo_linear1d_params(key, out_features, bias=True):
    """Deterministic reproduction of GeoLinear1D.reset_parameters()."""
    in_features = 1
    threshold = math.sqrt(6.0 / (in_features + out_features))
    weight = (
        jax.random.uniform(key, (in_features, out_features), dtype=jnp.float32)
        * 2.0 * threshold
        - threshold
    )
    radius = jnp.abs(weight).reshape(out_features)
    Lambda = (0.0 / radius) if bias else None     # bias_init = 0.0 -> zeros
    return weight, Lambda, radius


def _ref_forward(x, weight, Lambda, radius):
    """Pure-JAX reference with torch's op order: (x @ (w/|w|) + Lambda) * radius."""
    sign_w = weight / jnp.abs(weight)
    out = x @ sign_w
    if Lambda is not None:
        out = out + Lambda
    return out * radius


if __name__ == "__main__":
    key = jax.random.PRNGKey(0)
    k_param, k_x = jax.random.split(key)

    # Primary demo: out_features=32 exercises the packed lane-dense (MXU-dot) path.
    out_features = 32
    batch, seq = 2, 8
    weight, Lambda, radius = init_geo_linear1d_params(k_param, out_features, bias=True)
    x = jax.random.normal(k_x, (batch, seq, 1), dtype=jnp.float32)

    out = jax.block_until_ready(geo_linear1d(x, weight, Lambda, radius))
    ref = _ref_forward(x, weight, Lambda, radius)
    assert out.shape == (batch, seq, out_features)
    assert jnp.allclose(out, ref, atol=1e-5, rtol=1e-5), "packed-path mismatch vs reference"

    # Packed path with M not a multiple of G (row padding + slicing), n=32, g=4, m=7.
    k_a, k_b = jax.random.split(k_x)
    x_pad = jax.random.normal(k_a, (7, 1), dtype=jnp.float32)
    out_pad = jax.block_until_ready(geo_linear1d(x_pad, weight, Lambda, radius))
    ref_pad = _ref_forward(x_pad, weight, Lambda, radius)
    assert out_pad.shape == (7, out_features)
    assert jnp.allclose(out_pad, ref_pad, atol=1e-5, rtol=1e-5), "packed M-pad mismatch"

    # General lane-dense path (N=128) with bias=False.
    k2, k3 = jax.random.split(k_b)
    w2, lam2, rad2 = init_geo_linear1d_params(k2, 128, bias=False)
    x2 = jax.random.normal(k3, (4, 3, 1), dtype=jnp.float32)
    out2 = jax.block_until_ready(geo_linear1d(x2, w2, lam2, rad2))
    ref2 = _ref_forward(x2, w2, lam2, rad2)
    assert out2.shape == (4, 3, 128)
    assert jnp.allclose(out2, ref2, atol=1e-5, rtol=1e-5), "general-path mismatch vs reference"

    # General path with column padding (N=120 -> padded to 128, then sliced).
    k4, k5 = jax.random.split(k3)
    w3, lam3, rad3 = init_geo_linear1d_params(k4, 120, bias=True)
    x3 = jax.random.normal(k5, (3, 5, 1), dtype=jnp.float32)
    out3 = jax.block_until_ready(geo_linear1d(x3, w3, lam3, rad3))
    ref3 = _ref_forward(x3, w3, lam3, rad3)
    assert out3.shape == (3, 5, 120)
    assert jnp.allclose(out3, ref3, atol=1e-5, rtol=1e-5), "N-padded path mismatch vs reference"

    print("KERNEL_OK")
</pallas_src>

<mosaic_0001>
module attributes {stable_mosaic.version = 11 : i64} {
  func.func @_packed_kernel(%arg0: i32, %arg1: memref<4x4xf32, #tpu.memory_space<vmem>>, %arg2: memref<4x128xf32, #tpu.memory_space<vmem>>, %arg3: memref<1x128xf32, #tpu.memory_space<vmem>>, %arg4: memref<4x128xf32, #tpu.memory_space<vmem>>) attributes {dimension_semantics = [#tpu.dimension_semantics<parallel>], iteration_bounds = array<i64: 1>, scalar_prefetch = 0 : i64, scratch_operands = 0 : i64, tpu.core_type = #tpu.core_type<tc>, window_params = [{transform_indices = @transform_0, window_bounds = array<i64: 4, 4>}, {pipeline_mode = #tpu.pipeline_mode<synchronous>, transform_indices = @transform_1, window_bounds = array<i64: 4, 128>}, {pipeline_mode = #tpu.pipeline_mode<synchronous>, transform_indices = @transform_2, window_bounds = array<i64: 1, 128>}, {transform_indices = @transform_3, window_bounds = array<i64: 4, 128>}]} {
    %c0 = arith.constant 0 : index
    %c0_0 = arith.constant 0 : index
    %0 = vector.load %arg1[%c0, %c0_0] : memref<4x4xf32, #tpu.memory_space<vmem>>, vector<4x4xf32>
    %c0_1 = arith.constant 0 : index
    %c0_2 = arith.constant 0 : index
    %1 = vector.load %arg2[%c0_1, %c0_2] : memref<4x128xf32, #tpu.memory_space<vmem>>, vector<4x128xf32>
    %cst = arith.constant dense<0.000000e+00> : vector<4x128xf32>
    %2 = tpu.matmul %0, %1, %cst {dimension_numbers = #tpu.dot_dimension_numbers<[1], [0], [0], [1], [0, 0, 1, 1], [], []>} : vector<4x4xf32>, vector<4x128xf32>, vector<4x128xf32> -> vector<4x128xf32>
    %c0_3 = arith.constant 0 : index
    %c0_4 = arith.constant 0 : index
    %3 = vector.load %arg3[%c0_3, %c0_4] : memref<1x128xf32, #tpu.memory_space<vmem>>, vector<1x128xf32>
    %4 = vector.broadcast %3 : vector<1x128xf32> to vector<4x128xf32>
    %5 = arith.addf %2, %4 : vector<4x128xf32>
    %c0_5 = arith.constant 0 : index
    %c0_6 = arith.constant 0 : index
    %6 = vector.load %arg4[%c0_5, %c0_6] : memref<4x128xf32, #tpu.memory_space<vmem>>, vector<4x128xf32>
    tpu.vector_store %arg4[%c0_5, %c0_6], %5 {strides = array<i32>} : memref<4x128xf32, #tpu.memory_space<vmem>>, vector<4x128xf32>,
    return
  }
  func.func @transform_0(%arg0: i32) -> (i32, i32) {
    %c0_i32 = arith.constant 0 : i32
    %c0_i32_0 = arith.constant 0 : i32
    return %arg0, %c0_i32 : i32, i32
  }
  func.func @transform_1(%arg0: i32) -> (i32, i32) {
    %c0_i32 = arith.constant 0 : i32
    %c0_i32_0 = arith.constant 0 : i32
    %c0_i32_1 = arith.constant 0 : i32
    return %c0_i32, %c0_i32_0 : i32, i32
  }
  func.func @transform_2(%arg0: i32) -> (i32, i32) {
    %c0_i32 = arith.constant 0 : i32
    %c0_i32_0 = arith.constant 0 : i32
    %c0_i32_1 = arith.constant 0 : i32
    return %c0_i32, %c0_i32_0 : i32, i32
  }
  func.func @transform_3(%arg0: i32) -> (i32, i32) {
    %c0_i32 = arith.constant 0 : i32
    %c0_i32_0 = arith.constant 0 : i32
    return %arg0, %c0_i32 : i32, i32
  }
}

</mosaic_0001>

<bundles_post_ra>
// kernel: tpu_custom_call.1
= control target key start
LH: loop header
LB: loop body
LE: loop exit
PB: predicated region body
PF: predicated region fallthrough
CT: control target
= control target key end

     0   :  { %8 = vsyncpa [#allocation3], 0  ;;  %s294_s0 = inlined_call_operand.hbm [shape: f32[4,4], index: 0, kind: input, shape index: {}]   ;;  %s295_s1 = inlined_call_operand.hbm [shape: f32[4,128], index: 1, kind: input, shape index: {}]   ;;  %s296_s2 = inlined_call_operand.vmem [shape: f32[1,128], index: 2, kind: input, shape index: {}]   ;;  %s297_s3 = inlined_call_operand.hbm [shape: f32[4,128], index: 3, kind: output, shape index: {}]  }
   0x1   :  { %9 = vsyncpa [#allocation6], 0 }
   0x2   :  { %10 = vsyncpa [#allocation4], 0  ;;  %s230_s12 = smov [#allocation2]   ;;  %s231_s14 = smov [#allocation5]  }
   0x3   :  { %s17_s13 = sshll.u32 %s230_s12, 4  ;;  %s27_s15 = sshll.u32 %s231_s14, 4  ;;  %s18_s13 = int_to_ptr.vmem [resolvable:$true] %s17_s13  ;;  %s28_s15 = int_to_ptr.vmem [resolvable:$true] %s27_s15 }
   0x4   :  { %s158_s18 = scalar_lea.hbm %s294_s0, 64 }
   0x5   :  { %p159_p0 = scmp.ne.s32.totalorder %s294_s0, %s158_s18  ;;  %p162_p1 = scmp.lt.u32.totalorder %s158_s18, %s294_s0 }
   0x7   :  { %p164_p2 = pnand %p162_p1, %p159_p0 }
   0x9   :  { %167 = shalt.err (!%p164_p2)
}
   0xa   :  { %s168_s23 = scalar_lea.vmem %s18_s13, 64  ;;  %p173_p4 = scmp.lt.s32.totalorder %s18_s13, %s18_s13 }
   0xb   :  { %p169_p3 = scmp.ne.s32.totalorder %s18_s13, %s168_s23  ;;  %p174_p5 = scmp.lt.s32.totalorder %s168_s23, %s168_s23 }
   0xd   :  { %p175_p6 = por %p174_p5, %p173_p4 }
   0xf   :  { %p176_p7 = pnand %p175_p6, %p169_p3 }
  0x11   :  { %179 = shalt.err (!%p176_p7)
}
  0x12   :  { %20 = dma.hbm_to_vmem [thread:$0]  %s294_s0, 64, %s18_s13, [#allocation3]  }
  0x13   :  { %s180_s28 = scalar_lea.hbm %s295_s1, 64 }
  0x14   :  { %p181_p8 = scmp.ne.s32.totalorder %s295_s1, %s180_s28  ;;  %p184_p9 = scmp.lt.u32.totalorder %s180_s28, %s295_s1 }
  0x16   :  { %p186_p10 = pnand %p184_p9, %p181_p8 }
  0x18   :  { %189 = shalt.err (!%p186_p10)
}
  0x19   :  { %s190_s6 = scalar_lea.vmem %s28_s15, 64  ;;  %p195_p12 = scmp.lt.s32.totalorder %s28_s15, %s28_s15 }
  0x1a   :  { %p191_p11 = scmp.ne.s32.totalorder %s28_s15, %s190_s6  ;;  %p196_p13 = scmp.lt.s32.totalorder %s190_s6, %s190_s6 }
  0x1c   :  { %p197_p0 = por %p196_p13, %p195_p12 }
  0x1e   :  { %p198_p1 = pnand %p197_p0, %p191_p11 }
  0x20   :  { %201 = shalt.err (!%p198_p1)
}
  0x21   :  { %30 = dma.hbm_to_vmem [thread:$0]  %s295_s1, 64, %s28_s15, [#allocation6]  }
  0x22   :  { %224 = dma.done.wait [#allocation3], 64  }
  0x23   :  { %225 = vsyncadd [#allocation3], 4294967232 }
  0x24   :  { %226 = dma.done.wait [#allocation6], 64  }
  0x25   :  { %227 = vsyncadd [#allocation6], 4294967232  ;;  %v232_v0 = vmov 0.0   ;;  %vm233_vm0 = vmmov 0   ;;  %vm52_vm1 = vcmask 1043456   ;;  %vm48_vm2 = vcmask 31744  }
  0x26   :  { %148 = vmatprep.subr.mxu0 %v232_v0  ;;  %150 = vmatprep.mubr.msk.f32.mxu0 %vm233_vm0, %v232_v0  ;;  %v40_v1 = vld [vmem:[#allocation5] sm:$0xf]  ;;  %v39_v2 = vld [vmem:[#allocation2] sm:$0xf]  ;;  %s234_s10 = smov [#allocation7]  }
  0x27   :  { %149 = vmatpush3.msk.msra.mxu0 %vm52_vm1, %v40_v1  ;;  %v143_v3 = vld [vmem:[%s296_s2] ss:$0 sm:$0xff]  ;;  %s133_s1 = sshll.u32 %s234_s10, 4  ;;  %s134_s1 = int_to_ptr.vmem [resolvable:$true] %s133_s1 }
  0x28   :  { %151 = vmatmul.mubr.msk.f32.vlgmr.msra.gmra.mrb[0].mxu0 %vm48_vm2, %v39_v2  ;;  %s202_s11 = scalar_lea.vmem %s134_s1, 64  ;;  %p207_p3 = scmp.lt.s32.totalorder %s134_s1, %s134_s1 }
  0x29   :  { %p203_p2 = scmp.ne.s32.totalorder %s134_s1, %s202_s11  ;;  %p208_p4 = scmp.lt.s32.totalorder %s202_s11, %s202_s11 }
  0x2b   :  { %p209_p5 = por %p208_p4, %p207_p3 }
  0x2d   :  { %p210_p6 = pnand %p209_p5, %p203_p2 }
  0xfb   :  { %v122_v4 = vpop.f32.mrb[0].mxu0 }
  0xfc   :  { %v123_v5 = vadd.f32 %v143_v3, %v122_v4  ;;  %v152_v6 = vpop.f32.mrb[1].mxu0 }
  0xfe   :  { %126 = vst [vmem:[#allocation7] sm:$0xf] %v123_v5 }
  0xff   :  { %213 = shalt.err (!%p210_p6)
}
 0x100   :  { %s214_s14 = scalar_lea.hbm %s297_s3, 64 }
 0x101   :  { %p215_p7 = scmp.ne.s32.totalorder %s297_s3, %s214_s14  ;;  %p218_p8 = scmp.lt.u32.totalorder %s214_s14, %s297_s3 }
 0x103   :  { %p220_p9 = pnand %p218_p8, %p215_p7 }
 0x105   :  { %223 = shalt.err (!%p220_p9)
}
 0x106   :  { %136 = dma.vmem_to_hbm [thread:$0]  %s134_s1, 64, %s297_s3, [#allocation4]  }
 0x107   :  { %228 = dma.done.wait [#allocation4], 64  }
 0x108   :  { %229 = vsyncadd [#allocation4], 4294967232 }
 0x109   :  { %140 = vsyncpa [#allocation3], 1 }
 0x10a   :  { %141 = vsyncpa [#allocation6], 1 }
 0x10b   :  { %142 = vsyncpa [#allocation4], 1 }

</bundles_post_ra>
